<compile_context>
chip_gen: v7x
topology: tpu7x:2x2x1
jax: 0.10.0
libtpu: 0.0.40
codegen_flags: <defaults>
</compile_context>

<pallas_src>
import jax
import jax.numpy as jnp
from jax.experimental import pallas as pl
from jax.experimental.pallas import tpu as pltpu

LANE = 128  # TPU vreg lane width


# ----------------------------------------------------------------------------
# Kernel (VPU path, small C): single effective channel mix, unrolled FMAs.
#   w_ref : SMEM (C, C) f32   effective folded weight (scalar-prefetched)
#   x_ref : VMEM (Nb, C, T)   channels-first activation block (lanes = spatial)
#   o_ref : VMEM (Nb, C, T)
#   out[:, co, :] = sum_ci w[co, ci] * x[:, ci, :]
# Spatial columns are independent (contraction is only over C), so any garbage
# lanes in a partial final block never reach valid output lanes; Pallas clips
# the out-of-bounds part of the output DMA.
# ----------------------------------------------------------------------------
def _mixed_graph_kernel_vpu(w_ref, x_ref, o_ref):
    C = x_ref.shape[1]
    for co in range(C):
        acc = w_ref[co, 0] * x_ref[:, 0, :]
        for ci in range(1, C):
            acc = acc + w_ref[co, ci] * x_ref[:, ci, :]
        o_ref[:, co, :] = acc


# ----------------------------------------------------------------------------
# Kernel (MXU path, larger C): one dot per block, weight resident in VMEM.
#   x_ref : VMEM (1, C, T),  w_ref : VMEM (C, C),  o_ref : VMEM (1, C, T)
# ----------------------------------------------------------------------------
def _mixed_graph_kernel_mxu(x_ref, w_ref, o_ref):
    o_ref[0] = jnp.dot(w_ref[...], x_ref[0], preferred_element_type=jnp.float32)


def mixed_graph_forward(x_ncs, w_eff, *, target_block_bytes=1 << 20,
                        mxu_min_channels=32):
    """Fused two-edge mixed-op forward with a pre-folded effective weight.

    x_ncs : [N, C, S] float32 activations (S = H*W), channels-first.
    w_eff : [C, C] float32 effective weight ([C_out, C_in]); arch weights and
            both edges already folded in by the caller.
    """
    N, C, S = x_ncs.shape
    x_ncs = x_ncs.astype(jnp.float32)
    w_eff = w_eff.astype(jnp.float32)
    item = 4  # f32 bytes

    # ----- block sizing -----------------------------------------------------
    # Lane-dense spatial tile (multiple of 128 lanes), capped so one block is
    # about `target_block_bytes`; no input padding — Pallas clips the partial
    # final block.
    s_pad = pl.cdiv(S, LANE) * LANE
    t_cap = max(LANE, (target_block_bytes // (C * item * LANE)) * LANE)
    t = int(min(s_pad, t_cap))
    # Fold batch into the block up to the same byte budget (VPU path only).
    nb = int(max(1, min(N, target_block_bytes // (C * t * item))))
    # Keep at least 2 grid steps when possible so both v7x TensorCores work.
    if pl.cdiv(N, nb) * pl.cdiv(S, t) < 2:
        if N >= 2:
            nb = int(pl.cdiv(N, 2))
        elif S > LANE:
            t = int(max(LANE, pl.cdiv(pl.cdiv(S, 2), LANE) * LANE))

    out_shape = jax.ShapeDtypeStruct((N, C, S), jnp.float32)
    compiler_params = pltpu.CompilerParams(
        dimension_semantics=("parallel", "parallel"))

    if C < mxu_min_channels:
        # VPU path: W_eff in SMEM via scalar prefetch, unrolled FMA channel mix.
        grid = (pl.cdiv(N, nb), pl.cdiv(S, t))
        out = pl.pallas_call(
            _mixed_graph_kernel_vpu,
            out_shape=out_shape,
            grid_spec=pltpu.PrefetchScalarGridSpec(
                num_scalar_prefetch=1,            # w_eff lands in SMEM
                grid=grid,
                in_specs=[
                    pl.BlockSpec((nb, C, t), lambda n, s, w: (n, 0, s)),
                ],
                out_specs=pl.BlockSpec((nb, C, t), lambda n, s, w: (n, 0, s)),
            ),
            compiler_params=compiler_params,
        )(w_eff, x_ncs)
    else:
        # MXU path: W_eff resident in VMEM (constant index_map), one dot/block.
        grid = (N, pl.cdiv(S, t))
        out = pl.pallas_call(
            _mixed_graph_kernel_mxu,
            out_shape=out_shape,
            grid_spec=pltpu.PrefetchScalarGridSpec(
                num_scalar_prefetch=0,
                grid=grid,
                in_specs=[
                    pl.BlockSpec((1, C, t), lambda n, s: (n, 0, s)),
                    pl.BlockSpec((C, C), lambda n, s: (0, 0)),   # resident
                ],
                out_specs=pl.BlockSpec((1, C, t), lambda n, s: (n, 0, s)),
            ),
            compiler_params=compiler_params,
        )(x_ncs, w_eff)
    return out


# ----------------------------------------------------------------------------
# Minimal concrete MetaGraph (JAX/Pallas flavoured).
# ----------------------------------------------------------------------------
class PallasMetaGraph:
    """Concrete stand-in for naslib MetaGraph with a 3-node linear DAG."""

    PRIMITIVES = ["identity", "zero", "conv1x1"]

    def __init__(self, channels):
        self.channels = channels
        self.primitives = list(self.PRIMITIVES)
        self._build_graph()

    # ----- graph construction ("_build_graph") -----
    def _build_graph(self):
        C = self.channels
        self.nodes = {
            0: {"type": "input", "op": None, "preprocessing": None},
            1: {"type": "inter", "op": "sum", "preprocessing": None},
            2: {"type": "output", "op": "sum", "preprocessing": None},
        }
        # Deterministic parameter init (synthetic, no checkpoint).
        k = jax.random.PRNGKey(0)
        k_w01, k_w12, k_a01, k_a12 = jax.random.split(k, 4)
        scale = 1.0 / jnp.sqrt(jnp.float32(C))
        self.edges = {
            (0, 1): {
                "op_choices": list(self.PRIMITIVES),
                "op_kwargs": {"C": C},
                "arch_weight": 0.1 * jax.random.normal(k_a01, (3,), jnp.float32),
                "op": {"w": jax.random.normal(k_w01, (C, C), jnp.float32) * scale},
            },
            (1, 2): {
                "op_choices": list(self.PRIMITIVES),
                "op_kwargs": {"C": C},
                "arch_weight": 0.1 * jax.random.normal(k_a12, (3,), jnp.float32),
                "op": {"w": jax.random.normal(k_w12, (C, C), jnp.float32) * scale},
            },
        }

    # ----- accessors mirroring MetaGraph -----
    def get_node_type(self, n):
        return self.nodes[n]["type"]

    def is_input(self, n):
        return self.get_node_type(n) == "input"

    def is_inter(self, n):
        return self.get_node_type(n) == "inter"

    def is_output(self, n):
        return self.get_node_type(n) == "output"

    def input_nodes(self):
        return [n for n in self.nodes if self.is_input(n)]

    def inter_nodes(self):
        return [n for n in self.nodes if self.is_inter(n)]

    def output_nodes(self):
        return [n for n in self.nodes if self.is_output(n)]

    def get_node_attributes(self, n, exclude=None):
        d = self.nodes[n]
        if exclude is not None:
            d = {k: v for k, v in d.items() if k not in exclude}
        return d

    def get_edge_attributes(self, u, v, exclude=None):
        d = self.edges[(u, v)]
        if exclude is not None:
            d = {k: vv for k, vv in d.items() if k not in exclude}
        return d

    def get_node_preprocessing(self, n):
        return self.nodes[n].get("preprocessing")

    def get_node_op(self, n):
        return self.nodes[n].get("op")

    def get_edge_op(self, u, v):
        return self.edges[(u, v)].get("op")

    def get_edge_op_choices(self, u, v):
        return self.edges[(u, v)]["op_choices"]

    def get_edge_op_kwargs(self, u, v):
        return self.edges[(u, v)]["op_kwargs"]

    def get_edge_arch_weights(self, u, v):
        return self.edges[(u, v)]["arch_weight"]

    def set_primitives(self, primitives):
        self.primitives = primitives

    def get_primitives(self):
        return getattr(self, "primitives", None)

    # TODO(synk): `parse(optimizer)` mutates the graph with optimizer-specific
    # torch modules; it has no Pallas equivalent and is omitted.

    # ----- effective weight fold (glue, tiny CxC math in JAX) -----
    def _effective_weight(self):
        C = self.channels
        eye = jnp.eye(C, dtype=jnp.float32)
        w_edge = []
        for e in ((0, 1), (1, 2)):
            a = jax.nn.softmax(self.edges[e]["arch_weight"])
            w = self.edges[e]["op"]["w"]
            # mixed op = a_id * I + a_zero * 0 + a_conv * W, as one CxC matrix
            w_edge.append(a[0] * eye + a[2] * w)
        # chain 0->1->2:  out = W12_eff @ (W01_eff @ x)
        return (w_edge[1] @ w_edge[0]).astype(jnp.float32)

    # ----- forward -----
    def forward(self, x_nchw):
        """x_nchw: [N, C, H, W] float32 (PyTorch convention)."""
        N, C, H, W = x_nchw.shape
        assert C == self.channels
        # NCHW kept as-is: only a reshape, zero transposes.
        x = x_nchw.reshape(N, C, H * W).astype(jnp.float32)
        out = mixed_graph_forward(x, self._effective_weight())
        return out.reshape(N, C, H, W)

    __call__ = forward


# ----------------------------------------------------------------------------
# Reference (pure JAX, unfolded two-edge form) for a correctness check.
# ----------------------------------------------------------------------------
def _reference_forward(graph, x_nchw):
    N, C, H, W = x_nchw.shape
    cur = x_nchw.reshape(N, C, H * W).astype(jnp.float32)
    for e in ((0, 1), (1, 2)):
        a = jax.nn.softmax(graph.edges[e]["arch_weight"])
        w = graph.edges[e]["op"]["w"]
        cur = a[0] * cur + a[2] * jnp.einsum("oc,ncs->nos", w, cur)
    return cur.reshape(N, C, H, W)


if __name__ == "__main__":
    N, C, H, W = 2, 4, 16, 16
    key = jax.random.PRNGKey(0)
    x = jax.random.normal(key, (N, C, H, W), jnp.float32)

    graph = PallasMetaGraph(channels=C)
    out = graph(x)
    out = jax.block_until_ready(out)

    ref = _reference_forward(graph, x)
    assert out.shape == (N, C, H, W)
    assert jnp.allclose(out, ref, atol=1e-5, rtol=1e-5)

    print("KERNEL_OK")
</pallas_src>

<mosaic_0001>
module attributes {stable_mosaic.version = 11 : i64} {
  func.func @_mixed_graph_kernel_vpu(%arg0: i32, %arg1: i32, %arg2: memref<4x4xf32, #tpu.memory_space<smem>>, %arg3: memref<1x4x256xf32, #tpu.memory_space<vmem>>, %arg4: memref<1x4x256xf32, #tpu.memory_space<vmem>>) attributes {dimension_semantics = [#tpu.dimension_semantics<parallel>, #tpu.dimension_semantics<parallel>], iteration_bounds = array<i64: 2, 1>, scalar_prefetch = 1 : i64, scratch_operands = 0 : i64, tpu.core_type = #tpu.core_type<tc>, window_params = [{transform_indices = @transform_0, window_bounds = array<i64: 1, 4, 256>}, {transform_indices = @transform_1, window_bounds = array<i64: 1, 4, 256>}]} {
    %c0 = arith.constant 0 : index
    %c0_0 = arith.constant 0 : index
    %0 = memref.load %arg2[%c0, %c0_0] : memref<4x4xf32, #tpu.memory_space<smem>>
    %c0_1 = arith.constant 0 : index
    %c0_2 = arith.constant 0 : index
    %c0_3 = arith.constant 0 : index
    %1 = vector.load %arg3[%c0_1, %c0_2, %c0_3] : memref<1x4x256xf32, #tpu.memory_space<vmem>>, vector<1x1x256xf32>
    %2 = vector.shape_cast %1 : vector<1x1x256xf32> to vector<1x256xf32>
    %3 = vector.broadcast %0 : f32 to vector<1x256xf32>
    %4 = arith.mulf %3, %2 : vector<1x256xf32>
    %c0_4 = arith.constant 0 : index
    %c1 = arith.constant 1 : index
    %5 = memref.load %arg2[%c0_4, %c1] : memref<4x4xf32, #tpu.memory_space<smem>>
    %c0_5 = arith.constant 0 : index
    %c1_6 = arith.constant 1 : index
    %c0_7 = arith.constant 0 : index
    %6 = vector.load %arg3[%c0_5, %c1_6, %c0_7] : memref<1x4x256xf32, #tpu.memory_space<vmem>>, vector<1x1x256xf32>
    %7 = vector.shape_cast %6 : vector<1x1x256xf32> to vector<1x256xf32>
    %8 = vector.broadcast %5 : f32 to vector<1x256xf32>
    %9 = arith.mulf %8, %7 : vector<1x256xf32>
    %10 = arith.addf %4, %9 : vector<1x256xf32>
    %c0_8 = arith.constant 0 : index
    %c2 = arith.constant 2 : index
    %11 = memref.load %arg2[%c0_8, %c2] : memref<4x4xf32, #tpu.memory_space<smem>>
    %c0_9 = arith.constant 0 : index
    %c2_10 = arith.constant 2 : index
    %c0_11 = arith.constant 0 : index
    %12 = vector.load %arg3[%c0_9, %c2_10, %c0_11] : memref<1x4x256xf32, #tpu.memory_space<vmem>>, vector<1x1x256xf32>
    %13 = vector.shape_cast %12 : vector<1x1x256xf32> to vector<1x256xf32>
    %14 = vector.broadcast %11 : f32 to vector<1x256xf32>
    %15 = arith.mulf %14, %13 : vector<1x256xf32>
    %16 = arith.addf %10, %15 : vector<1x256xf32>
    %c0_12 = arith.constant 0 : index
    %c3 = arith.constant 3 : index
    %17 = memref.load %arg2[%c0_12, %c3] : memref<4x4xf32, #tpu.memory_space<smem>>
    %c0_13 = arith.constant 0 : index
    %c3_14 = arith.constant 3 : index
    %c0_15 = arith.constant 0 : index
    %18 = vector.load %arg3[%c0_13, %c3_14, %c0_15] : memref<1x4x256xf32, #tpu.memory_space<vmem>>, vector<1x1x256xf32>
    %19 = vector.shape_cast %18 : vector<1x1x256xf32> to vector<1x256xf32>
    %20 = vector.broadcast %17 : f32 to vector<1x256xf32>
    %21 = arith.mulf %20, %19 : vector<1x256xf32>
    %22 = arith.addf %16, %21 : vector<1x256xf32>
    %c0_16 = arith.constant 0 : index
    %c0_17 = arith.constant 0 : index
    %c0_18 = arith.constant 0 : index
    %23 = vector.load %arg4[%c0_16, %c0_17, %c0_18] : memref<1x4x256xf32, #tpu.memory_space<vmem>>, vector<1x1x256xf32>
    %24 = vector.shape_cast %23 : vector<1x1x256xf32> to vector<1x256xf32>
    %25 = vector.shape_cast %22 : vector<1x256xf32> to vector<1x1x256xf32>
    tpu.vector_store %arg4[%c0_16, %c0_17, %c0_18], %25 {strides = array<i32>} : memref<1x4x256xf32, #tpu.memory_space<vmem>>, vector<1x1x256xf32>,
    %c1_19 = arith.constant 1 : index
    %c0_20 = arith.constant 0 : index
    %26 = memref.load %arg2[%c1_19, %c0_20] : memref<4x4xf32, #tpu.memory_space<smem>>
    %c0_21 = arith.constant 0 : index
    %c0_22 = arith.constant 0 : index
    %c0_23 = arith.constant 0 : index
    %27 = vector.load %arg3[%c0_21, %c0_22, %c0_23] : memref<1x4x256xf32, #tpu.memory_space<vmem>>, vector<1x1x256xf32>
    %28 = vector.shape_cast %27 : vector<1x1x256xf32> to vector<1x256xf32>
    %29 = vector.broadcast %26 : f32 to vector<1x256xf32>
    %30 = arith.mulf %29, %28 : vector<1x256xf32>
    %c1_24 = arith.constant 1 : index
    %c1_25 = arith.constant 1 : index
    %31 = memref.load %arg2[%c1_24, %c1_25] : memref<4x4xf32, #tpu.memory_space<smem>>
    %c0_26 = arith.constant 0 : index
    %c1_27 = arith.constant 1 : index
    %c0_28 = arith.constant 0 : index
    %32 = vector.load %arg3[%c0_26, %c1_27, %c0_28] : memref<1x4x256xf32, #tpu.memory_space<vmem>>, vector<1x1x256xf32>
    %33 = vector.shape_cast %32 : vector<1x1x256xf32> to vector<1x256xf32>
    %34 = vector.broadcast %31 : f32 to vector<1x256xf32>
    %35 = arith.mulf %34, %33 : vector<1x256xf32>
    %36 = arith.addf %30, %35 : vector<1x256xf32>
    %c1_29 = arith.constant 1 : index
    %c2_30 = arith.constant 2 : index
    %37 = memref.load %arg2[%c1_29, %c2_30] : memref<4x4xf32, #tpu.memory_space<smem>>
    %c0_31 = arith.constant 0 : index
    %c2_32 = arith.constant 2 : index
    %c0_33 = arith.constant 0 : index
    %38 = vector.load %arg3[%c0_31, %c2_32, %c0_33] : memref<1x4x256xf32, #tpu.memory_space<vmem>>, vector<1x1x256xf32>
    %39 = vector.shape_cast %38 : vector<1x1x256xf32> to vector<1x256xf32>
    %40 = vector.broadcast %37 : f32 to vector<1x256xf32>
    %41 = arith.mulf %40, %39 : vector<1x256xf32>
    %42 = arith.addf %36, %41 : vector<1x256xf32>
    %c1_34 = arith.constant 1 : index
    %c3_35 = arith.constant 3 : index
    %43 = memref.load %arg2[%c1_34, %c3_35] : memref<4x4xf32, #tpu.memory_space<smem>>
    %c0_36 = arith.constant 0 : index
    %c3_37 = arith.constant 3 : index
    %c0_38 = arith.constant 0 : index
    %44 = vector.load %arg3[%c0_36, %c3_37, %c0_38] : memref<1x4x256xf32, #tpu.memory_space<vmem>>, vector<1x1x256xf32>
    %45 = vector.shape_cast %44 : vector<1x1x256xf32> to vector<1x256xf32>
    %46 = vector.broadcast %43 : f32 to vector<1x256xf32>
    %47 = arith.mulf %46, %45 : vector<1x256xf32>
    %48 = arith.addf %42, %47 : vector<1x256xf32>
    %c0_39 = arith.constant 0 : index
    %c1_40 = arith.constant 1 : index
    %c0_41 = arith.constant 0 : index
    %49 = vector.load %arg4[%c0_39, %c1_40, %c0_41] : memref<1x4x256xf32, #tpu.memory_space<vmem>>, vector<1x1x256xf32>
    %50 = vector.shape_cast %49 : vector<1x1x256xf32> to vector<1x256xf32>
    %51 = vector.shape_cast %48 : vector<1x256xf32> to vector<1x1x256xf32>
    tpu.vector_store %arg4[%c0_39, %c1_40, %c0_41], %51 {strides = array<i32>} : memref<1x4x256xf32, #tpu.memory_space<vmem>>, vector<1x1x256xf32>,
    %c2_42 = arith.constant 2 : index
    %c0_43 = arith.constant 0 : index
    %52 = memref.load %arg2[%c2_42, %c0_43] : memref<4x4xf32, #tpu.memory_space<smem>>
    %c0_44 = arith.constant 0 : index
    %c0_45 = arith.constant 0 : index
    %c0_46 = arith.constant 0 : index
    %53 = vector.load %arg3[%c0_44, %c0_45, %c0_46] : memref<1x4x256xf32, #tpu.memory_space<vmem>>, vector<1x1x256xf32>
    %54 = vector.shape_cast %53 : vector<1x1x256xf32> to vector<1x256xf32>
    %55 = vector.broadcast %52 : f32 to vector<1x256xf32>
    %56 = arith.mulf %55, %54 : vector<1x256xf32>
    %c2_47 = arith.constant 2 : index
    %c1_48 = arith.constant 1 : index
    %57 = memref.load %arg2[%c2_47, %c1_48] : memref<4x4xf32, #tpu.memory_space<smem>>
    %c0_49 = arith.constant 0 : index
    %c1_50 = arith.constant 1 : index
    %c0_51 = arith.constant 0 : index
    %58 = vector.load %arg3[%c0_49, %c1_50, %c0_51] : memref<1x4x256xf32, #tpu.memory_space<vmem>>, vector<1x1x256xf32>
    %59 = vector.shape_cast %58 : vector<1x1x256xf32> to vector<1x256xf32>
    %60 = vector.broadcast %57 : f32 to vector<1x256xf32>
    %61 = arith.mulf %60, %59 : vector<1x256xf32>
    %62 = arith.addf %56, %61 : vector<1x256xf32>
    %c2_52 = arith.constant 2 : index
    %c2_53 = arith.constant 2 : index
    %63 = memref.load %arg2[%c2_52, %c2_53] : memref<4x4xf32, #tpu.memory_space<smem>>
    %c0_54 = arith.constant 0 : index
    %c2_55 = arith.constant 2 : index
    %c0_56 = arith.constant 0 : index
    %64 = vector.load %arg3[%c0_54, %c2_55, %c0_56] : memref<1x4x256xf32, #tpu.memory_space<vmem>>, vector<1x1x256xf32>
    %65 = vector.shape_cast %64 : vector<1x1x256xf32> to vector<1x256xf32>
    %66 = vector.broadcast %63 : f32 to vector<1x256xf32>
    %67 = arith.mulf %66, %65 : vector<1x256xf32>
    %68 = arith.addf %62, %67 : vector<1x256xf32>
    %c2_57 = arith.constant 2 : index
    %c3_58 = arith.constant 3 : index
    %69 = memref.load %arg2[%c2_57, %c3_58] : memref<4x4xf32, #tpu.memory_space<smem>>
    %c0_59 = arith.constant 0 : index
    %c3_60 = arith.constant 3 : index
    %c0_61 = arith.constant 0 : index
    %70 = vector.load %arg3[%c0_59, %c3_60, %c0_61] : memref<1x4x256xf32, #tpu.memory_space<vmem>>, vector<1x1x256xf32>
    %71 = vector.shape_cast %70 : vector<1x1x256xf32> to vector<1x256xf32>
    %72 = vector.broadcast %69 : f32 to vector<1x256xf32>
    %73 = arith.mulf %72, %71 : vector<1x256xf32>
    %74 = arith.addf %68, %73 : vector<1x256xf32>
    %c0_62 = arith.constant 0 : index
    %c2_63 = arith.constant 2 : index
    %c0_64 = arith.constant 0 : index
    %75 = vector.load %arg4[%c0_62, %c2_63, %c0_64] : memref<1x4x256xf32, #tpu.memory_space<vmem>>, vector<1x1x256xf32>
    %76 = vector.shape_cast %75 : vector<1x1x256xf32> to vector<1x256xf32>
    %77 = vector.shape_cast %74 : vector<1x256xf32> to vector<1x1x256xf32>
    tpu.vector_store %arg4[%c0_62, %c2_63, %c0_64], %77 {strides = array<i32>} : memref<1x4x256xf32, #tpu.memory_space<vmem>>, vector<1x1x256xf32>,
    %c3_65 = arith.constant 3 : index
    %c0_66 = arith.constant 0 : index
    %78 = memref.load %arg2[%c3_65, %c0_66] : memref<4x4xf32, #tpu.memory_space<smem>>
    %c0_67 = arith.constant 0 : index
    %c0_68 = arith.constant 0 : index
    %c0_69 = arith.constant 0 : index
    %79 = vector.load %arg3[%c0_67, %c0_68, %c0_69] : memref<1x4x256xf32, #tpu.memory_space<vmem>>, vector<1x1x256xf32>
    %80 = vector.shape_cast %79 : vector<1x1x256xf32> to vector<1x256xf32>
    %81 = vector.broadcast %78 : f32 to vector<1x256xf32>
    %82 = arith.mulf %81, %80 : vector<1x256xf32>
    %c3_70 = arith.constant 3 : index
    %c1_71 = arith.constant 1 : index
    %83 = memref.load %arg2[%c3_70, %c1_71] : memref<4x4xf32, #tpu.memory_space<smem>>
    %c0_72 = arith.constant 0 : index
    %c1_73 = arith.constant 1 : index
    %c0_74 = arith.constant 0 : index
    %84 = vector.load %arg3[%c0_72, %c1_73, %c0_74] : memref<1x4x256xf32, #tpu.memory_space<vmem>>, vector<1x1x256xf32>
    %85 = vector.shape_cast %84 : vector<1x1x256xf32> to vector<1x256xf32>
    %86 = vector.broadcast %83 : f32 to vector<1x256xf32>
    %87 = arith.mulf %86, %85 : vector<1x256xf32>
    %88 = arith.addf %82, %87 : vector<1x256xf32>
    %c3_75 = arith.constant 3 : index
    %c2_76 = arith.constant 2 : index
    %89 = memref.load %arg2[%c3_75, %c2_76] : memref<4x4xf32, #tpu.memory_space<smem>>
    %c0_77 = arith.constant 0 : index
    %c2_78 = arith.constant 2 : index
    %c0_79 = arith.constant 0 : index
    %90 = vector.load %arg3[%c0_77, %c2_78, %c0_79] : memref<1x4x256xf32, #tpu.memory_space<vmem>>, vector<1x1x256xf32>
    %91 = vector.shape_cast %90 : vector<1x1x256xf32> to vector<1x256xf32>
    %92 = vector.broadcast %89 : f32 to vector<1x256xf32>
    %93 = arith.mulf %92, %91 : vector<1x256xf32>
    %94 = arith.addf %88, %93 : vector<1x256xf32>
    %c3_80 = arith.constant 3 : index
    %c3_81 = arith.constant 3 : index
    %95 = memref.load %arg2[%c3_80, %c3_81] : memref<4x4xf32, #tpu.memory_space<smem>>
    %c0_82 = arith.constant 0 : index
    %c3_83 = arith.constant 3 : index
    %c0_84 = arith.constant 0 : index
    %96 = vector.load %arg3[%c0_82, %c3_83, %c0_84] : memref<1x4x256xf32, #tpu.memory_space<vmem>>, vector<1x1x256xf32>
    %97 = vector.shape_cast %96 : vector<1x1x256xf32> to vector<1x256xf32>
    %98 = vector.broadcast %95 : f32 to vector<1x256xf32>
    %99 = arith.mulf %98, %97 : vector<1x256xf32>
    %100 = arith.addf %94, %99 : vector<1x256xf32>
    %c0_85 = arith.constant 0 : index
    %c3_86 = arith.constant 3 : index
    %c0_87 = arith.constant 0 : index
    %101 = vector.load %arg4[%c0_85, %c3_86, %c0_87] : memref<1x4x256xf32, #tpu.memory_space<vmem>>, vector<1x1x256xf32>
    %102 = vector.shape_cast %101 : vector<1x1x256xf32> to vector<1x256xf32>
    %103 = vector.shape_cast %100 : vector<1x256xf32> to vector<1x1x256xf32>
    tpu.vector_store %arg4[%c0_85, %c3_86, %c0_87], %103 {strides = array<i32>} : memref<1x4x256xf32, #tpu.memory_space<vmem>>, vector<1x1x256xf32>,
    return
  }
  func.func @transform_0(%arg0: i32, %arg1: i32, %arg2: memref<4x4xf32, #tpu.memory_space<smem>>) -> (i32, i32, i32) {
    %c0_i32 = arith.constant 0 : i32
    %c0_i32_0 = arith.constant 0 : i32
    return %arg0, %c0_i32, %arg1 : i32, i32, i32
  }
  func.func @transform_1(%arg0: i32, %arg1: i32, %arg2: memref<4x4xf32, #tpu.memory_space<smem>>) -> (i32, i32, i32) {
    %c0_i32 = arith.constant 0 : i32
    %c0_i32_0 = arith.constant 0 : i32
    return %arg0, %c0_i32, %arg1 : i32, i32, i32
  }
}

</mosaic_0001>

<bundles_post_ra>
// kernel: tpu_custom_call.1
= control target key start
LH: loop header
LB: loop body
LE: loop exit
PB: predicated region body
PF: predicated region fallthrough
CT: control target
= control target key end

     0   :  { %s840_s0 = inlined_call_operand.hbm [shape: f32[4,4], index: 0, kind: input, shape index: {}]   ;;  %s841_s1 = inlined_call_operand.hbm [shape: f32[2,4,256], index: 1, kind: input, shape index: {}]   ;;  %s842_s2 = inlined_call_operand.hbm [shape: f32[2,4,256], index: 2, kind: output, shape index: {}]  }
   0x1   :  { %s459_s11 = scalar_lea.hbm %s840_s0, 64 }
   0x2   :  { %p460_p0 = scmp.ne.s32.totalorder %s840_s0, %s459_s11  ;;  %p463_p1 = scmp.lt.u32.totalorder %s459_s11, %s840_s0 }
   0x4   :  { %p465_p2 = pnand %p463_p1, %p460_p0 }
   0x6   :  { %468 = shalt.err (!%p465_p2)  }
   0x7   :  { %s585_s16 = smov [#allocation3]  }
   0x8   :  { %8 = dma.hbm_to_smem %s840_s0, 64, %s585_s16, [#allocation2] }
   0x9   :  { %551 = dma.done.wait [#allocation2], 64 }
   0xa   :  { %552 = vsyncadd [#allocation2], 4294967232 }
   0xb   :  { %10 = sfence }
   0xc   :  { %11 = vsyncpa [#allocation5], 0 }
   0xd   :  { %13 = vsyncpa [#allocation5 + $0x1], 0 }
   0xe   :  { %14 = vsyncpa [#allocation6], 0 }
   0xf   :  { %16 = vsyncpa [#allocation6 + $0x1], 0  ;;  %s615_s19 = smov 0   ;;  %s617_s20 = smov 0  }
  0x10   :  { %s619_s21 = smov 0   ;;  %s621_s22 = smov 0  }
  0x11   :  { %s623_s23 = smov 0   ;;  %s625_s24 = smov 0  }
  0x12 LB: > { %s349_s0 = sadd.s32 4294967295, %s583_s24   ;;  %s350_s25 = sadd.s32 4294967294, %s583_s24   ;;  %s583_s24 = sphi %s625_s24, %s22_s24   ;;  %s579_s23 = sphi %s623_s23, %s860_s23   ;;  %s575_s22 = sphi %s621_s22, %s859_s22   ;;  %s571_s21 = sphi %s619_s21, %s858_s21   ;;  %s567_s20 = sphi %s617_s20, %s857_s20   ;;  %s563_s19 = sphi %s615_s19, %s856_s19  }
  0x13   : > { %s34_s26 = sadd.s32 1, %s579_s23  ;;  %s43_s27 = sadd.s32 1, %s571_s21 }
  0x14   : > { %p36_p3 = scmp.ge.s32.totalorder %s34_s26, 2  ;;  %p50_p4 = scmp.ne.s32.totalorder %s571_s21, %s567_s20 }
  0x15   : > { %p51_p5 = scmp.eq.s32.totalorder %s583_s24, 0  ;;  %p56_p6 = scmp.ne.s32.totalorder %s567_s20, %s563_s19 }
  0x16   : > { %s862_s26 = smov (%p36_p3, %s34_s26), 0  ;;  %p57_p8 = scmp.eq.s32.totalorder %s349_s0, 0 }
  0x17   : > { %p656_p7 = por %p51_p5, %p50_p4  ;;  %s38_s29 = ssub.s32 %s579_s23, %s862_s26 }
  0x18   : > { %p82_p9 = scmp.eq.s32.totalorder %s349_s0, 1  ;;  %p41_p10 = scmp.eq.s32.totalorder %s38_s29, 0 }
  0x19   : > { %p662_p11 = por %p57_p8, %p56_p6  ;;  %p88_p13 = scmp.eq.s32.totalorder %s350_s25, 1 }
  0x1a   : > { %p666_p12 = por %p82_p9, %p50_p4  ;;  %p408_p2 = scmp.lt.s32.totalorder %s583_s24, 2 }
  0x1b   : > { %s671_s4 = scalar_select %p41_p10, %s571_s21, %s43_s27  }
  0x1c   : > { %s846_s3 = scalar_select %p666_p12, 1, 0 }
  0x1d   : > { %p673_p0 = por %p88_p13, %p56_p6  ;;  %s108_s6 = sand.u32 1, %s571_s21  }
  0x1e   : > { %s353_s7 = sshll.u32 %s108_s6, 3  ;;  %s394_s8 = sshll.u32 %s579_s23, 7 }
  0x1f   : > { %s847_s5 = scalar_select %p673_p0, 1, 0 }
  0x20   : > { %s684_s11 = scalar_lea.hbm %s841_s1, %s394_s8  ;;  %s112_s12 = scalar_lea.vmem [#allocation4], %s353_s7 }
  0x21   : > { %s122_s13 = sshll.u32 %s112_s12, 4  ;;  %p690_p3 = pnand %p408_p2, %p656_p7  ;;  %s686_s13 = int_to_ptr.vmem [resolvable:$true] %s122_s13 }
  0x22   : > { %s109_s15 = scalar_lea.sflag [#allocation5], %s108_s6  ;;  %s469_s16 = scalar_lea.hbm %s684_s11, 128 }
  0x23   : > { %p470_p6 = scmp.ne.s32.totalorder %s684_s11, %s469_s16  ;;  %p471_p8 = pneg %p690_p3 }
  0x24   : > { %s474_s0 = scalar_lea.hbm %s841_s1, 256  ;;  %p475_p7 = scmp.lt.u32.totalorder %s684_s11, %s841_s1 }
  0x25   : > { %p472_p9 = pnand %p471_p8, %p470_p6  ;;  %p476_p13 = scmp.lt.u32.totalorder %s474_s0, %s469_s16 }
  0x26   : > { %p478_p1 = scmp.lt.u32.totalorder %s469_s16, %s684_s11 }
  0x27   : > { %p473_p10 = pneg %p472_p9  ;;  %p477_p2 = por %p476_p13, %p475_p7 }
  0x29   : > { %p479_p4 = por %p478_p1, %p477_p2 }
  0x2b   : > { %p480_p5 = pnand %p479_p4, %p473_p10 }
  0x2d   : > { %483 = shalt.err (!%p480_p5)
}
  0x2e   : > { %s484_s28 = scalar_lea.vmem %s686_s13, 128  ;;  %s586_s29 = smov [#allocation4]  }
  0x2f   : > { %p485_p6 = scmp.ne.s32.totalorder %s686_s13, %s484_s28  ;;  %s489_s6 = sshll.u32 %s586_s29, 4  ;;  %s490_s6 = int_to_ptr.vmem [resolvable:$false] %s489_s6 }
  0x30   : > { %s491_s7 = scalar_lea.vmem %s490_s6, 256  ;;  %p492_p12 = scmp.lt.s32.totalorder %s686_s13, %s490_s6 }
  0x31   : > { %p487_p9 = pnand %p485_p6, %p471_p8  ;;  %p493_p7 = scmp.lt.s32.totalorder %s491_s7, %s484_s28 }
  0x33   : > { %p488_p0 = pneg %p487_p9  ;;  %p494_p13 = por %p493_p7, %p492_p12 }
  0x35   : > { %p495_p1 = pnand %p494_p13, %p488_p0 }
  0x37   : > { %498 = shalt.err (!%p495_p1)
}
  0x38   : > { %403 = dma.hbm_to_vmem [thread:$0]  (!%p690_p3), %s684_s11, 128, %s686_s13, %s109_s15  }
  0x39   : > { %p849_p4 = scmp.lt.s32.totalorder %s583_s24, 3  ;;  %p850_p5 = scmp.ge.s32.totalorder %s583_s24, 1 }
  0x3b   : > { %p128_p8 = pnand %p850_p5, %p849_p4 }
  0x3c   : > { %s726_s8 = sand.u32 (!%p128_p8), 1, %s567_s20  }
  0x3d   : > { %131 = sbr.rel (%p128_p8) target bundleno = 107 (0x6b), region = 24  ;;  %s357_s9 = sshll.u32 (!%p128_p8), %s726_s8, 3 }
  0x3e   : > { %s134_s10 = scalar_lea.sflag (!%p128_p8), [#allocation5], %s726_s8  ;;  %s732_s12 = scalar_lea.vmem (!%p128_p8), [#allocation4], %s357_s9 }
  0x44   : > { %554 = dma.done.wait (%p662_p11), %s134_s10, 128  }
  0x45   : > { %556 = vsyncadd (%p662_p11), %s134_s10, 4294967168  ;;  %s158_s11 = sld [smem:[#allocation3]]  ;;  %s359_s13 = sld [smem:[#allocation3 + $0x1]]  ;;  %v159_v0 = vld [vmem:[%s732_s12] ss:$4 sm:$0x3]  ;;  %v180_v4 = vlaneseq }
  0x46   : > { %s361_s14 = sld [smem:[#allocation3 + $0x2]]  ;;  %s363_s15 = sld [smem:[#allocation3 + $0x3]]  ;;  %v360_v2 = vld [vmem:[%s732_s12 + $0x1] ss:$4 sm:$0x3] }
  0x47   : > { %s365_s16 = sld [smem:[#allocation3 + $0x80]]  ;;  %s366_s17 = sld [smem:[#allocation3 + $0x81]]  ;;  %v362_v7 = vld [vmem:[%s732_s12 + $0x2] ss:$4 sm:$0x3]  ;;  %vm758_vm0 = vcmp.lt.s32.totalorder %v180_v4, 256 }
  0x48   : > { %s738_s18 = sld [smem:[#allocation3 + $0x82]]  ;;  %s740_s0 = sld [smem:[#allocation3 + $0x83]]  ;;  %v364_v9 = vld [vmem:[%s732_s12 + $0x3] ss:$4 sm:$0x3] }
  0x49   : > { %s742_s25 = sld [smem:[#allocation3 + $0x100]]  ;;  %s744_s30 = sld [smem:[#allocation3 + $0x101]]  ;;  %v186_v12 = vld [vmem:[%s732_s12] ss:$4 sm:$0x3] }
  0x4a   : > { %v367_v14 = vld [vmem:[%s732_s12 + $0x1] ss:$4 sm:$0x3]  ;;  %v369_v19 = vld [vmem:[%s732_s12 + $0x2] ss:$4 sm:$0x3] }
  0x4b   : > { %v160_v1 = vstv %s158_s11  ;;  %v165_v3 = vstv %s359_s13  ;;  %v371_v20 = vld [vmem:[%s732_s12 + $0x3] ss:$4 sm:$0x3]  ;;  %v207_v24 = vld [vmem:[%s732_s12] ss:$4 sm:$0x3] }
  0x4c   : > { %v161_v5 = vmul.f32 %v160_v1, %v159_v0  ;;  %v166_v6 = vmul.f32 %v360_v2, %v165_v3  ;;  %v171_v8 = vstv %s361_s14  ;;  %v177_v10 = vstv %s363_s15  ;;  %v375_v25 = vld [vmem:[%s732_s12 + $0x1] ss:$4 sm:$0x3]  ;;  %s376_s27 = sld [smem:[#allocation3 + $0x102]]  ;;  %s378_s28 = sld [smem:[#allocation3 + $0x103]] }
  0x4d   : > { %v172_v11 = vmul.f32 %v362_v7, %v171_v8  ;;  %v187_v13 = vstv %s365_s16  ;;  %v178_v16 = vmul.f32 %v364_v9, %v177_v10  ;;  %v191_v18 = vstv %s366_s17  ;;  %s381_s29 = sld [smem:[#allocation3 + $0x180]]  ;;  %s382_s6 = sld [smem:[#allocation3 + $0x181]]  ;;  %v377_v37 = vld [vmem:[%s732_s12 + $0x2] ss:$4 sm:$0x3] }
  0x4e   : > { %v167_v15 = vadd.f32 %v166_v6, %v161_v5  ;;  %v188_v17 = vmul.f32 %v187_v13, %v186_v12  ;;  %v192_v21 = vmul.f32 %v367_v14, %v191_v18  ;;  %v196_v22 = vstv %s738_s18  ;;  %s766_s7 = scalar_lea.vmem [#allocation7], %s357_s9  ;;  %s384_s10 = sld [smem:[#allocation3 + $0x182]]  ;;  %v379_v40 = vld [vmem:[%s732_s12 + $0x3] ss:$4 sm:$0x3] }
  0x4f   : > { %v201_v23 = vstv %s740_s0  ;;  %v197_v28 = vmul.f32 %v369_v19, %v196_v22  ;;  %v208_v29 = vstv %s742_s25  ;;  %v212_v33 = vstv %s744_s30  ;;  %s386_s11 = sld [smem:[#allocation3 + $0x183]]  ;;  %v228_v42 = vld [vmem:[%s732_s12] ss:$4 sm:$0x3]  ;;  %s265_s9 = sshll.u32 %s766_s7, 4  ;;  %s785_s9 = int_to_ptr.vmem [resolvable:$true] %s265_s9 }
  0x50   : > { %v173_v26 = vadd.f32 %v172_v11, %v167_v15  ;;  %v193_v30 = vadd.f32 %v192_v21, %v188_v17  ;;  %v202_v31 = vmul.f32 %v371_v20, %v201_v23  ;;  %v209_v32 = vmul.f32 %v208_v29, %v207_v24  ;;  %v383_v45 = vld [vmem:[%s732_s12 + $0x1] ss:$4 sm:$0x3]  ;;  %v385_v48 = vld [vmem:[%s732_s12 + $0x2] ss:$4 sm:$0x3] }
  0x51   : > { %v213_v35 = vmul.f32 %v375_v25, %v212_v33  ;;  %v387_v52 = vld [vmem:[%s732_s12 + $0x3] ss:$4 sm:$0x3]  ;;  %s395_s13 = sshll.u32 %s575_s22, 7  ;;  %s249_s16 = scalar_lea.sflag [#allocation6], %s726_s8 }
  0x52   : > { %v179_v34 = vadd.f32 %v178_v16, %v173_v26  ;;  %v198_v36 = vadd.f32 %v197_v28, %v193_v30  ;;  %v217_v41 = vstv %s376_s27  ;;  %v222_v44 = vstv %s378_s28  ;;  %s790_s15 = scalar_lea.hbm %s842_s2, %s395_s13  ;;  %s499_s17 = scalar_lea.vmem %s785_s9, 128 }
  0x53   : > { %v214_v39 = vadd.f32 %v213_v35, %v209_v32  ;;  %v218_v43 = vmul.f32 %v377_v37, %v217_v41  ;;  %v223_v46 = vmul.f32 %v379_v40, %v222_v44  ;;  %v229_v47 = vstv %s381_s29  ;;  %p500_p11 = scmp.ne.s32.totalorder %s785_s9, %s499_s17  ;;  %p853_p12 = scmp.ne.s32.totalorder %s846_s3, 0 }
  0x54   : > { %184 = vst.msk [vmem:[%s766_s7] ss:$4 sm:$0x3] %vm758_vm0, %v179_v34  ;;  %v203_v38 = vadd.f32 %v202_v31, %v198_v36  ;;  %v230_v50 = vmul.f32 %v229_v47, %v228_v42  ;;  %v233_v51 = vstv %s382_s6  ;;  %v238_v54 = vstv %s384_s10  ;;  %s587_s22 = smov [#allocation7]  }
  0x55   : > { %v219_v49 = vadd.f32 %v218_v43, %v214_v39  ;;  %v234_v53 = vmul.f32 %v383_v45, %v233_v51  ;;  %v239_v56 = vmul.f32 %v385_v48, %v238_v54  ;;  %v243_v57 = vstv %s386_s11  ;;  %p501_p0 = pnand %p500_p11, %p853_p12  ;;  %s503_s18 = sshll.u32 %s587_s22, 4  ;;  %s504_s18 = int_to_ptr.vmem [resolvable:$false] %s503_s18 }
  0x56   : > { %372 = vst.msk [vmem:[%s766_s7 + $0x1] ss:$4 sm:$0x3] %vm758_vm0, %v203_v38  ;;  %v244_v59 = vmul.f32 %v387_v52, %v243_v57  ;;  %s505_s0 = scalar_lea.vmem %s504_s18, 256  ;;  %p506_p10 = scmp.lt.s32.totalorder %s785_s9, %s504_s18 }
  0x57   : > { %v224_v55 = vadd.f32 %v223_v46, %v219_v49  ;;  %v235_v58 = vadd.f32 %v234_v53, %v230_v50  ;;  %p502_p3 = pneg %p501_p0  ;;  %p507_p2 = scmp.lt.s32.totalorder %s505_s0, %s499_s17 }
  0x59   : > { %380 = vst.msk [vmem:[%s766_s7 + $0x2] ss:$4 sm:$0x3] %vm758_vm0, %v224_v55  ;;  %v240_v60 = vadd.f32 %v239_v56, %v235_v58  ;;  %p508_p6 = por %p507_p2, %p506_p10 }
  0x5b   : > { %v245_v61 = vadd.f32 %v244_v59, %v240_v60  ;;  %p509_p9 = pnand %p508_p6, %p502_p3 }
  0x5d   : > { %388 = vst.msk [vmem:[%s766_s7 + $0x3] ss:$4 sm:$0x3] %vm758_vm0, %v245_v61 }
  0x5e   : > { %512 = shalt.err (!%p509_p9)
}
  0x5f   : > { %s513_s8 = scalar_lea.hbm %s790_s15, 128  ;;  %s517_s27 = scalar_lea.hbm %s842_s2, 256 }
  0x60   : > { %p514_p7 = scmp.ne.s32.totalorder %s790_s15, %s513_s8  ;;  %p518_p4 = scmp.lt.u32.totalorder %s790_s15, %s842_s2 }
  0x61   : > { %p519_p5 = scmp.lt.u32.totalorder %s517_s27, %s513_s8  ;;  %p521_p11 = scmp.lt.u32.totalorder %s513_s8, %s790_s15 }
  0x62   : > { %p515_p13 = pnand %p514_p7, %p853_p12 }
  0x63   : > { %p520_p8 = por %p519_p5, %p518_p4 }
  0x64   : > { %p516_p1 = pneg %p515_p13 }
  0x65   : > { %p522_p0 = por %p521_p11, %p520_p8 }
  0x67   : > { %p523_p3 = pnand %p522_p0, %p516_p1 }
  0x69   : > { %526 = shalt.err (!%p523_p3)
}
  0x6a   : > { %398 = dma.vmem_to_hbm [thread:$0]  (%p853_p12), %s785_s9, 128, %s790_s15, %s249_s16  }
  0x6b PF: > { %s277_s6 = sand.u32 1, %s563_s19   ;;  %p854_p10 = scmp.ne.s32.totalorder %s847_s5, 0 }
  0x6c   : > { %p855_p2 = scmp.ge.s32.totalorder %s583_s24, 2  ;;  %s278_s7 = scalar_lea.sflag [#allocation6], %s277_s6 }
  0x6e   : > { %p405_p6 = pnand %p855_p2, %p854_p10 }
  0x70   : > { %558 = dma.done.wait (!%p405_p6), %s278_s7, 128  }
  0x71   : > { %560 = vsyncadd (!%p405_p6), %s278_s7, 4294967168  ;;  %s22_s24 = sadd.s32 1, %s583_s24   ;;  %s856_s19 = smov %s567_s20 }
  0x72   : > { %p19_p9 = scmp.ge.s32.totalorder %s22_s24, 4   ;;  %s857_s20 = smov %s571_s21 }
  0x73   : > { %s858_s21 = smov %s671_s4  ;;  %s859_s22 = smov %s579_s23 }
  0x74   : > { %s860_s23 = smov %s862_s26  ;;  %21 = sbr.rel (!%p19_p9) target bundleno = 18 (0x12), region = 75 }
  0x7b   :  { %283 = vsyncpa [#allocation5], 1 }
  0x7c   :  { %285 = vsyncpa [#allocation5 + $0x1], 1 }
  0x7d   :  { %286 = vsyncpa [#allocation6], 1 }
  0x7e   :  { %288 = vsyncpa [#allocation6 + $0x1], 1 }

</bundles_post_ra>
